<compile_context>
chip_gen: v5e
topology: v5e:2x2
jax: 0.10.0
libtpu: 0.0.40
codegen_flags: <defaults>
</compile_context>

<pallas_src>
import jax
import jax.numpy as jnp
from jax import lax
from jax.experimental import pallas as pl
from jax.experimental.pallas import tpu as pltpu

LN_EPS = 1e-5                       # torch.nn.LayerNorm default
_VMEM_BUDGET = 48 * 1024 * 1024     # safe on v7x (64 MiB) and v5e/v6e (128 MiB)


def _layernorm(x, gamma, beta):
    # x: (tm, D) f32; gamma/beta: (1, D) f32 broadcast over rows.
    mean = jnp.mean(x, axis=-1, keepdims=True)
    cent = x - mean
    var = jnp.mean(cent * cent, axis=-1, keepdims=True)
    return cent * lax.rsqrt(var + LN_EPS) * gamma + beta


def cag_kernel(att_ref, q_ref, w_eh_ref, w_q_ref, bias_ref, ln_ref, out_ref):
    D = out_ref.shape[-1]
    att = att_ref[...].astype(jnp.float32)
    q = q_ref[...].astype(jnp.float32)

    # MXU pass 1 (wide): [E_pre | G_pre(att part)] = att @ [W_E^T | W_h^T] + [b_E | b_h+b_q]
    eg = jnp.dot(att, w_eh_ref[...], preferred_element_type=jnp.float32) + bias_ref[...]
    # MXU pass 2: Q contribution to the gate path.
    qg = jnp.dot(q, w_q_ref[...], preferred_element_type=jnp.float32)

    E = jnp.maximum(eg[:, :D], 0.0)
    G = jnp.maximum(eg[:, D:] + qg, 0.0)

    ln = ln_ref[...].astype(jnp.float32)        # rows: [gE, bE, gG, bG]
    out = _layernorm(E, ln[0:1], ln[1:2]) * _layernorm(G, ln[2:3], ln[3:4])
    out_ref[...] = out.astype(out_ref.dtype)


def prepare_params(params):
    """One-time host-side packing (keep outside the per-forward path)."""
    D = params["W_E_w"].shape[0]
    return {
        # torch Linear stores (out, in); y = x @ W^T + b -> pre-transpose once.
        "w_eh": jnp.concatenate([params["W_E_w"].T, params["W_h_w"].T], axis=1),  # (D, 2D)
        "w_q": jnp.asarray(params["W_q_w"].T),                                    # (D, D)
        "bias": jnp.concatenate(
            [params["W_E_b"], params["W_h_b"] + params["W_q_b"]]).reshape(1, 2 * D),
        "ln": jnp.stack([params["ln_E_g"], params["ln_E_b"],
                         params["ln_G_g"], params["ln_G_b"]], axis=0),            # (4, D)
    }


def _round_up(x, m):
    return ((x + m - 1) // m) * m


def _pick_tm(N, D, requested):
    # Static VMEM: weights (D,2D)+(D,D), bias (1,2D), ln (4,D), double-buffered.
    fixed = 2 * (3 * D * D + 2 * D + 4 * D) * 4
    # Per-row VMEM: att + q input tiles and output tile (double-buffered) plus
    # ~6*D f32 of live intermediates inside the kernel body.
    per_row = (2 * 2 * D + 2 * D + 6 * D) * 4
    avail = max(_VMEM_BUDGET - fixed, per_row * 8)
    tm = min(requested, avail // per_row, _round_up(N, 8))
    return max(8, (tm // 8) * 8)


def contextual_attention_gate(attended, Q, prepared, *, tm=256):
    """attended, Q: (B, S, D). prepared: output of prepare_params()."""
    B, S, D = attended.shape
    N = B * S
    tm = _pick_tm(N, D, tm)
    n_pad = _round_up(N, tm)

    att2 = attended.reshape(N, D)
    q2 = Q.reshape(N, D)
    if n_pad != N:
        pad = ((0, n_pad - N), (0, 0))
        att2 = jnp.pad(att2, pad)
        q2 = jnp.pad(q2, pad)

    row_spec = pl.BlockSpec((tm, D), lambda i: (i, 0))
    grid = (n_pad // tm,)

    cost = pl.CostEstimate(
        flops=2 * n_pad * D * (3 * D),
        transcendentals=2 * n_pad,
        bytes_accessed=(3 * n_pad * D + 3 * D * D + 6 * D) * 4,
    )

    out2 = pl.pallas_call(
        cag_kernel,
        out_shape=jax.ShapeDtypeStruct((n_pad, D), attended.dtype),
        grid_spec=pltpu.PrefetchScalarGridSpec(
            num_scalar_prefetch=0,
            grid=grid,
            in_specs=[
                row_spec,                                     # attended rows
                row_spec,                                     # Q rows
                pl.BlockSpec((D, 2 * D), lambda i: (0, 0)),   # [W_E^T | W_h^T]
                pl.BlockSpec((D, D), lambda i: (0, 0)),       # W_q^T
                pl.BlockSpec((1, 2 * D), lambda i: (0, 0)),   # [b_E | b_h+b_q]
                pl.BlockSpec((4, D), lambda i: (0, 0)),       # LN gamma/beta pack
            ],
            out_specs=row_spec,
        ),
        compiler_params=pltpu.CompilerParams(
            dimension_semantics=("parallel",),
            vmem_limit_bytes=_VMEM_BUDGET,
        ),
        cost_estimate=cost,
    )(att2, q2, prepared["w_eh"], prepared["w_q"], prepared["bias"], prepared["ln"])

    return out2[:N].reshape(B, S, D)


def init_params(key, dim):
    """Deterministic init matching the shapes of the torch module."""
    ks = jax.random.split(key, 6)
    bound = 1.0 / jnp.sqrt(dim)
    u = lambda k, shape: jax.random.uniform(k, shape, jnp.float32, -bound, bound)
    return {
        "W_E_w": u(ks[0], (dim, dim)), "W_E_b": u(ks[1], (dim,)),
        "W_h_w": u(ks[2], (dim, dim)), "W_h_b": u(ks[3], (dim,)),
        "W_q_w": u(ks[4], (dim, dim)), "W_q_b": u(ks[5], (dim,)),
        "ln_E_g": jnp.ones((dim,), jnp.float32), "ln_E_b": jnp.zeros((dim,), jnp.float32),
        "ln_G_g": jnp.ones((dim,), jnp.float32), "ln_G_b": jnp.zeros((dim,), jnp.float32),
    }


def reference(attended, Q, p):
    def ln(x, g, b):
        m = jnp.mean(x, -1, keepdims=True)
        v = jnp.mean((x - m) ** 2, -1, keepdims=True)
        return (x - m) / jnp.sqrt(v + LN_EPS) * g + b
    E = jax.nn.relu(attended @ p["W_E_w"].T + p["W_E_b"])
    G = jax.nn.relu(attended @ p["W_h_w"].T + p["W_h_b"] + Q @ p["W_q_w"].T + p["W_q_b"])
    return ln(E, p["ln_E_g"], p["ln_E_b"]) * ln(G, p["ln_G_g"], p["ln_G_b"])


if __name__ == "__main__":
    B, S, D = 2, 8, 32
    key = jax.random.PRNGKey(0)
    k_att, k_q, k_p = jax.random.split(key, 3)

    attended = jax.random.normal(k_att, (B, S, D), jnp.float32)
    Q = jax.random.normal(k_q, (B, S, D), jnp.float32)
    params = init_params(k_p, D)
    prepared = prepare_params(params)

    out = contextual_attention_gate(attended, Q, prepared)
    out = jax.block_until_ready(out)

    ref = reference(attended, Q, params)
    assert out.shape == (B, S, D)
    assert jnp.allclose(out, ref, atol=1e-5, rtol=1e-5), "mismatch vs reference"

    print("KERNEL_OK")
</pallas_src>

<mosaic_0001>
module attributes {stable_mosaic.version = 11 : i64} {
  func.func @cag_kernel(%arg0: i32, %arg1: memref<16x32xf32, #tpu.memory_space<vmem>>, %arg2: memref<16x32xf32, #tpu.memory_space<vmem>>, %arg3: memref<32x64xf32, #tpu.memory_space<vmem>>, %arg4: memref<32x32xf32, #tpu.memory_space<vmem>>, %arg5: memref<1x64xf32, #tpu.memory_space<vmem>>, %arg6: memref<4x32xf32, #tpu.memory_space<vmem>>, %arg7: memref<16x32xf32, #tpu.memory_space<vmem>>) attributes {dimension_semantics = [#tpu.dimension_semantics<parallel>], iteration_bounds = array<i64: 1>, scalar_prefetch = 0 : i64, scratch_operands = 0 : i64, tpu.core_type = #tpu.core_type<tc>, window_params = [{transform_indices = @transform_0, window_bounds = array<i64: 16, 32>}, {transform_indices = @transform_1, window_bounds = array<i64: 16, 32>}, {pipeline_mode = #tpu.pipeline_mode<synchronous>, transform_indices = @transform_2, window_bounds = array<i64: 32, 64>}, {pipeline_mode = #tpu.pipeline_mode<synchronous>, transform_indices = @transform_3, window_bounds = array<i64: 32, 32>}, {pipeline_mode = #tpu.pipeline_mode<synchronous>, transform_indices = @transform_4, window_bounds = array<i64: 1, 64>}, {pipeline_mode = #tpu.pipeline_mode<synchronous>, transform_indices = @transform_5, window_bounds = array<i64: 4, 32>}, {transform_indices = @transform_6, window_bounds = array<i64: 16, 32>}]} {
    %c0 = arith.constant 0 : index
    %c0_0 = arith.constant 0 : index
    %0 = vector.load %arg1[%c0, %c0_0] : memref<16x32xf32, #tpu.memory_space<vmem>>, vector<16x32xf32>
    %c0_1 = arith.constant 0 : index
    %c0_2 = arith.constant 0 : index
    %1 = vector.load %arg2[%c0_1, %c0_2] : memref<16x32xf32, #tpu.memory_space<vmem>>, vector<16x32xf32>
    %c0_3 = arith.constant 0 : index
    %c0_4 = arith.constant 0 : index
    %2 = vector.load %arg3[%c0_3, %c0_4] : memref<32x64xf32, #tpu.memory_space<vmem>>, vector<32x64xf32>
    %cst = arith.constant dense<0.000000e+00> : vector<16x64xf32>
    %3 = tpu.matmul %0, %2, %cst {dimension_numbers = #tpu.dot_dimension_numbers<[1], [0], [0], [1], [0, 0, 1, 1], [], []>} : vector<16x32xf32>, vector<32x64xf32>, vector<16x64xf32> -> vector<16x64xf32>
    %c0_5 = arith.constant 0 : index
    %c0_6 = arith.constant 0 : index
    %4 = vector.load %arg5[%c0_5, %c0_6] : memref<1x64xf32, #tpu.memory_space<vmem>>, vector<1x64xf32>
    %5 = vector.broadcast %4 : vector<1x64xf32> to vector<16x64xf32>
    %6 = arith.addf %3, %5 : vector<16x64xf32>
    %c0_7 = arith.constant 0 : index
    %c0_8 = arith.constant 0 : index
    %7 = vector.load %arg4[%c0_7, %c0_8] : memref<32x32xf32, #tpu.memory_space<vmem>>, vector<32x32xf32>
    %cst_9 = arith.constant dense<0.000000e+00> : vector<16x32xf32>
    %8 = tpu.matmul %1, %7, %cst_9 {dimension_numbers = #tpu.dot_dimension_numbers<[1], [0], [0], [1], [0, 0, 1, 1], [], []>} : vector<16x32xf32>, vector<32x32xf32>, vector<16x32xf32> -> vector<16x32xf32>
    %9 = vector.extract_strided_slice %6 {offsets = [0, 0], sizes = [16, 32], strides = [1, 1]} : vector<16x64xf32> to vector<16x32xf32>
    %cst_10 = arith.constant 0.000000e+00 : f32
    %10 = vector.broadcast %cst_10 : f32 to vector<16x32xf32>
    %11 = arith.maximumf %9, %10 : vector<16x32xf32>
    %12 = vector.extract_strided_slice %6 {offsets = [0, 32], sizes = [16, 32], strides = [1, 1]} : vector<16x64xf32> to vector<16x32xf32>
    %13 = arith.addf %12, %8 : vector<16x32xf32>
    %cst_11 = arith.constant 0.000000e+00 : f32
    %14 = vector.broadcast %cst_11 : f32 to vector<16x32xf32>
    %15 = arith.maximumf %13, %14 : vector<16x32xf32>
    %c0_12 = arith.constant 0 : index
    %c0_13 = arith.constant 0 : index
    %16 = vector.load %arg6[%c0_12, %c0_13] : memref<4x32xf32, #tpu.memory_space<vmem>>, vector<4x32xf32>
    %17 = vector.extract_strided_slice %16 {offsets = [0, 0], sizes = [1, 32], strides = [1, 1]} : vector<4x32xf32> to vector<1x32xf32>
    %18 = vector.extract_strided_slice %16 {offsets = [1, 0], sizes = [1, 32], strides = [1, 1]} : vector<4x32xf32> to vector<1x32xf32>
    %cst_14 = arith.constant dense<0.000000e+00> : vector<16xf32>
    %19 = vector.multi_reduction <add>, %11, %cst_14 [1] : vector<16x32xf32> to vector<16xf32>
    %20 = vector.shape_cast %19 : vector<16xf32> to vector<16x1xf32>
    %cst_15 = arith.constant 3.200000e+01 : f32
    %21 = vector.broadcast %cst_15 : f32 to vector<16x1xf32>
    %22 = arith.divf %20, %21 : vector<16x1xf32>
    %23 = vector.broadcast %22 : vector<16x1xf32> to vector<16x32xf32>
    %24 = arith.subf %11, %23 : vector<16x32xf32>
    %25 = arith.mulf %24, %24 : vector<16x32xf32>
    %cst_16 = arith.constant dense<0.000000e+00> : vector<16xf32>
    %26 = vector.multi_reduction <add>, %25, %cst_16 [1] : vector<16x32xf32> to vector<16xf32>
    %27 = vector.shape_cast %26 : vector<16xf32> to vector<16x1xf32>
    %cst_17 = arith.constant 3.200000e+01 : f32
    %28 = vector.broadcast %cst_17 : f32 to vector<16x1xf32>
    %29 = arith.divf %27, %28 : vector<16x1xf32>
    %cst_18 = arith.constant 9.99999974E-6 : f32
    %30 = vector.broadcast %cst_18 : f32 to vector<16x1xf32>
    %31 = arith.addf %29, %30 : vector<16x1xf32>
    %32 = math.rsqrt %31 : vector<16x1xf32>
    %33 = vector.broadcast %32 : vector<16x1xf32> to vector<16x32xf32>
    %34 = arith.mulf %24, %33 : vector<16x32xf32>
    %35 = vector.broadcast %17 : vector<1x32xf32> to vector<16x32xf32>
    %36 = arith.mulf %34, %35 : vector<16x32xf32>
    %37 = vector.broadcast %18 : vector<1x32xf32> to vector<16x32xf32>
    %38 = arith.addf %36, %37 : vector<16x32xf32>
    %39 = vector.extract_strided_slice %16 {offsets = [2, 0], sizes = [1, 32], strides = [1, 1]} : vector<4x32xf32> to vector<1x32xf32>
    %40 = vector.extract_strided_slice %16 {offsets = [3, 0], sizes = [1, 32], strides = [1, 1]} : vector<4x32xf32> to vector<1x32xf32>
    %cst_19 = arith.constant dense<0.000000e+00> : vector<16xf32>
    %41 = vector.multi_reduction <add>, %15, %cst_19 [1] : vector<16x32xf32> to vector<16xf32>
    %42 = vector.shape_cast %41 : vector<16xf32> to vector<16x1xf32>
    %cst_20 = arith.constant 3.200000e+01 : f32
    %43 = vector.broadcast %cst_20 : f32 to vector<16x1xf32>
    %44 = arith.divf %42, %43 : vector<16x1xf32>
    %45 = vector.broadcast %44 : vector<16x1xf32> to vector<16x32xf32>
    %46 = arith.subf %15, %45 : vector<16x32xf32>
    %47 = arith.mulf %46, %46 : vector<16x32xf32>
    %cst_21 = arith.constant dense<0.000000e+00> : vector<16xf32>
    %48 = vector.multi_reduction <add>, %47, %cst_21 [1] : vector<16x32xf32> to vector<16xf32>
    %49 = vector.shape_cast %48 : vector<16xf32> to vector<16x1xf32>
    %cst_22 = arith.constant 3.200000e+01 : f32
    %50 = vector.broadcast %cst_22 : f32 to vector<16x1xf32>
    %51 = arith.divf %49, %50 : vector<16x1xf32>
    %cst_23 = arith.constant 9.99999974E-6 : f32
    %52 = vector.broadcast %cst_23 : f32 to vector<16x1xf32>
    %53 = arith.addf %51, %52 : vector<16x1xf32>
    %54 = math.rsqrt %53 : vector<16x1xf32>
    %55 = vector.broadcast %54 : vector<16x1xf32> to vector<16x32xf32>
    %56 = arith.mulf %46, %55 : vector<16x32xf32>
    %57 = vector.broadcast %39 : vector<1x32xf32> to vector<16x32xf32>
    %58 = arith.mulf %56, %57 : vector<16x32xf32>
    %59 = vector.broadcast %40 : vector<1x32xf32> to vector<16x32xf32>
    %60 = arith.addf %58, %59 : vector<16x32xf32>
    %61 = arith.mulf %38, %60 : vector<16x32xf32>
    %c0_24 = arith.constant 0 : index
    %c0_25 = arith.constant 0 : index
    %62 = vector.load %arg7[%c0_24, %c0_25] : memref<16x32xf32, #tpu.memory_space<vmem>>, vector<16x32xf32>
    tpu.vector_store %arg7[%c0_24, %c0_25], %61 {strides = array<i32>} : memref<16x32xf32, #tpu.memory_space<vmem>>, vector<16x32xf32>,
    return
  }
  func.func @transform_0(%arg0: i32) -> (i32, i32) {
    %c0_i32 = arith.constant 0 : i32
    %c0_i32_0 = arith.constant 0 : i32
    return %arg0, %c0_i32 : i32, i32
  }
  func.func @transform_1(%arg0: i32) -> (i32, i32) {
    %c0_i32 = arith.constant 0 : i32
    %c0_i32_0 = arith.constant 0 : i32
    return %arg0, %c0_i32 : i32, i32
  }
  func.func @transform_2(%arg0: i32) -> (i32, i32) {
    %c0_i32 = arith.constant 0 : i32
    %c0_i32_0 = arith.constant 0 : i32
    %c0_i32_1 = arith.constant 0 : i32
    return %c0_i32, %c0_i32_0 : i32, i32
  }
  func.func @transform_3(%arg0: i32) -> (i32, i32) {
    %c0_i32 = arith.constant 0 : i32
    %c0_i32_0 = arith.constant 0 : i32
    %c0_i32_1 = arith.constant 0 : i32
    return %c0_i32, %c0_i32_0 : i32, i32
  }
  func.func @transform_4(%arg0: i32) -> (i32, i32) {
    %c0_i32 = arith.constant 0 : i32
    %c0_i32_0 = arith.constant 0 : i32
    %c0_i32_1 = arith.constant 0 : i32
    return %c0_i32, %c0_i32_0 : i32, i32
  }
  func.func @transform_5(%arg0: i32) -> (i32, i32) {
    %c0_i32 = arith.constant 0 : i32
    %c0_i32_0 = arith.constant 0 : i32
    %c0_i32_1 = arith.constant 0 : i32
    return %c0_i32, %c0_i32_0 : i32, i32
  }
  func.func @transform_6(%arg0: i32) -> (i32, i32) {
    %c0_i32 = arith.constant 0 : i32
    %c0_i32_0 = arith.constant 0 : i32
    return %arg0, %c0_i32 : i32, i32
  }
}

</mosaic_0001>

<bundles_post_ra>
// kernel: tpu_custom_call.1
= control target key start
LH: loop header
LB: loop body
LE: loop exit
PB: predicated region body
PF: predicated region fallthrough
CT: control target
= control target key end

     0   :  { %11 = vsyncpa [#allocation3], 0  ;;  %s681_s0 = inlined_call_operand.hbm [shape: f32[16,32], index: 0, kind: input, shape index: {}]   ;;  %s682_s1 = inlined_call_operand.hbm [shape: f32[16,32], index: 1, kind: input, shape index: {}]   ;;  %s683_s2 = inlined_call_operand.hbm [shape: f32[32,64], index: 2, kind: input, shape index: {}]   ;;  %s684_s3 = inlined_call_operand.hbm [shape: f32[32,32], index: 3, kind: input, shape index: {}]   ;;  %s685_s4 = inlined_call_operand.hbm [shape: f32[1,64], index: 4, kind: input, shape index: {}]   ;;  %s686_s5 = inlined_call_operand.vmem [shape: f32[4,32], index: 5, kind: input, shape index: {}]   ;;  %s687_s6 = inlined_call_operand.hbm [shape: f32[16,32], index: 6, kind: output, shape index: {}]  }
   0x1   :  { %12 = vsyncpa [#allocation6], 0 }
   0x2   :  { %13 = vsyncpa [#allocation9], 0 }
   0x3   :  { %14 = vsyncpa [#allocation4], 0  ;;  %s32_s23 = sshll.u32 %s682_s1, 4  ;;  %s540_s24 = smov [#allocation5]   ;;  %s33_s23 = int_to_ptr.hbm [resolvable:$true] %s32_s23 }
   0x4   :  { %s34_s25 = sshll.u32 %s540_s24, 4  ;;  %s58_s28 = sshll.u32 %s684_s3, 4  ;;  %s35_s25 = int_to_ptr.vmem [resolvable:$true] %s34_s25  ;;  %s59_s28 = int_to_ptr.hbm [resolvable:$true] %s58_s28 }
   0x5   :  { %s541_s29 = smov 128   ;;  %s542_s30 = smov 8  }
   0x6   :  { %40 = dma.hbm_to_vmem [thread:$0]  %s33_s23, 256, %s35_s25, [#allocation6], %s541_s29, %s541_s29, %s542_s30  }
   0x7   :  { %s543_s7 = smov [#allocation8]   ;;  %s19_s1 = sshll.u32 %s681_s0, 4  ;;  %s20_s1 = int_to_ptr.hbm [resolvable:$true] %s19_s1 }
   0x8   :  { %s60_s8 = sshll.u32 %s543_s7, 4  ;;  %s45_s12 = sshll.u32 %s683_s2, 4  ;;  %s61_s8 = int_to_ptr.vmem [resolvable:$true] %s60_s8  ;;  %s46_s12 = int_to_ptr.hbm [resolvable:$true] %s45_s12 }
   0x9   :  { %66 = dma.hbm_to_vmem [thread:$0]  %s59_s28, 512, %s61_s8, [#allocation9], %s541_s29, %s541_s29, %s542_s30  }
   0xa   :  { %s544_s13 = smov [#allocation2]   ;;  %s545_s15 = smov [#allocation7]  }
   0xb   :  { %s21_s14 = sshll.u32 %s544_s13, 4  ;;  %s47_s0 = sshll.u32 %s545_s15, 4  ;;  %s22_s14 = int_to_ptr.vmem [resolvable:$true] %s21_s14  ;;  %s48_s0 = int_to_ptr.vmem [resolvable:$true] %s47_s0 }
   0xc   :  { %27 = dma.hbm_to_vmem [thread:$0]  %s20_s1, 256, %s22_s14, [#allocation3], %s541_s29, %s541_s29, %s542_s30  }
   0xd   :  { %s72_s18 = sshll.u32 %s685_s4, 4  ;;  %s546_s2 = smov [#allocation10]   ;;  %s73_s18 = int_to_ptr.hbm [resolvable:$true] %s72_s18 }
   0xe   :  { %53 = dma.hbm_to_vmem [thread:$0]  %s46_s12, 512, %s48_s0, [#allocation6], %s541_s29, %s541_s29, %s542_s30  }
   0xf   :  { %s74_s19 = sshll.u32 %s546_s2, 4  ;;  %s75_s19 = int_to_ptr.vmem [resolvable:$true] %s74_s19 }
  0x10   :  { %77 = dma.hbm_to_vmem [thread:$0]  %s73_s18, 16, %s75_s19, [#allocation9]  }
  0x11   :  { %532 = dma.done.wait [#allocation3], 256  }
  0x12   :  { %533 = vsyncadd [#allocation3], 4294967040 }
  0x13   :  { %534 = dma.done.wait [#allocation6], 768  }
  0x14   :  { %535 = vsyncadd [#allocation6], 4294966528 }
  0x15   :  { %536 = dma.done.wait [#allocation9], 528  }
  0x16   :  { %537 = vsyncadd [#allocation9], 4294966768  ;;  %v145_v0 = vld [vmem:[#allocation8 + $0x18] sm:$0xff]  ;;  %v144_v1 = vld [vmem:[#allocation8 + $0x10] sm:$0xff]  ;;  %vm112_vm0 = vcmask 261120   ;;  %s547_s4 = smov 32  }
  0x17   :  { %164 = vmatpush.msra.mxu1 %v145_v0  ;;  %362 = vmatpush.msra.mxu3 %v145_v0  ;;  %v143_v2 = vld [vmem:[#allocation8 + $0x8] sm:$0xff]  ;;  %v107_v3 = vld [vmem:[#allocation7 + $0x18] sm:$0xff]  ;;  %v106_v4 = vld [vmem:[#allocation7 + $0x10] sm:$0xff]  ;;  %s548_s20 = smov 96   ;;  %v549_v31 = vmov 32.0   ;;  %s339_s26 = sshll.u32 %s687_s6, 4  ;;  %s340_s26 = int_to_ptr.hbm [resolvable:$true] %s339_s26 }
  0x18   :  { %v142_v5 = vld [vmem:[#allocation8] sm:$0xff]  ;;  %131 = vmatpush.msra.mxu0 %v107_v3  ;;  %358 = vmatpush.msra.mxu2 %v107_v3  ;;  %v102_v6 = vld [vmem:[#allocation5] sm:$0xff]  ;;  %v103_v7 = vld [vmem:[#allocation5 + $0x8] sm:$0xff]  ;;  %378 = vrcp.f32 %v549_v31 }
  0x19   :  { %165 = vmatpush.msra.mxu1 %v144_v1  ;;  %363 = vmatpush.msra.mxu3 %v144_v1  ;;  %v105_v8 = vld [vmem:[#allocation7 + $0x8] sm:$0xff]  ;;  %v104_v9 = vld [vmem:[#allocation7] sm:$0xff] }
  0x1a   :  { %132 = vmatpush.msra.mxu0 %v106_v4  ;;  %359 = vmatpush.msra.mxu2 %v106_v4  ;;  %v100_v10 = vld [vmem:[#allocation2] sm:$0xff]  ;;  %v101_v11 = vld [vmem:[#allocation2 + $0x8] sm:$0xff] }
  0x1b   :  { %166 = vmatpush.msra.mxu1 %v143_v2  ;;  %364 = vmatpush.msra.mxu3 %v143_v2  ;;  %v377_v14 = vld [vmem:[#allocation10] ss:$0 sm:$0xff] }
  0x1c   :  { %133 = vmatpush.msra.mxu0 %v105_v8  ;;  %360 = vmatpush.msra.mxu2 %v105_v8  ;;  %v641_v46 = vld [vmem:[%s686_s5] sm:$0xf]  ;;  %s550_s5 = smov [#allocation11]  }
  0x1d   :  { %167 = vmatpush.msra.mxu1 %v142_v5  ;;  %365 = vmatpush.msra.mxu3 %v142_v5  ;;  %v307_v47 = vperm.slane %v641_v46, 2  ;;  %v314_v54 = vperm.slane %v641_v46, 3  ;;  %s337_s23 = sshll.u32 %s550_s5, 4  ;;  %s338_s23 = int_to_ptr.vmem [resolvable:$true] %s337_s23 }
  0x1e   :  { %356 = vmatmul.msk.f32.vlgmr.msra.gmra.mxu1 %vm112_vm0, %v102_v6  ;;  %357 = vmatmul.msk.f32.vlgmr.msra.gmra.mxu3 %vm112_vm0, %v103_v7  ;;  %v379_v32 = vpop.eup %378 }
  0x1f   :  { %134 = vmatpush.msra.mxu0 %v104_v9  ;;  %361 = vmatpush.msra.mxu2 %v104_v9  ;;  %v197_v33 = vmul.f32 32.0, %v379_v32  ;;  %vm201_vm1 = vweird.f32 %v379_v32 }
  0x20   :  { %354 = vmatmul.msk.f32.vlgmr.msra.gmra.mxu0 %vm112_vm0, %v100_v10  ;;  %355 = vmatmul.msk.f32.vlgmr.msra.gmra.mxu2 %vm112_vm0, %v101_v11 }
  0x21   :  { %v198_v34 = vsub.f32 1.0, %v197_v33 }
  0x23   :  { %v199_v35 = vmul.f32 %v379_v32, %v198_v34 }
  0x25   :  { %v200_v36 = vadd.f32 %v379_v32, %v199_v35 }
  0x27   :  { %v628_v37 = vsel %vm201_vm1, %v379_v32, %v200_v36 }
  0x9b   :  { %v169_v12 = vpop.f32.mrf.mxu1 }
  0x9c   :  { %179 = vrot.lane.b32.xlu0 %v169_v12, %s547_s4 }
  0x9d   :  { %v136_v15 = vpop.f32.mrf.mxu0 }
  0x9e   :  { %v619_v16 = vadd.f32 %v377_v14, %v136_v15 }
  0xa0   :  { %v175_v29 = vmax.f32 %v619_v16, 0.0 }
  0xa1   :  { %v172_v13 = vpop.f32.mrf.mxu3 }
  0xa2   :  { %v190_v30 = vsel %vm112_vm0, %v175_v29, 0.0 }
  0xa3   :  { %v139_v19 = vpop.f32.mrf.mxu2 }
  0xa4   :  { %181 = vrot.lane.b32.xlu0 %v172_v13, %s547_s4  ;;  %v140_v21 = vadd.f32 %v377_v14, %v139_v19 }
  0xa6   :  { %v176_v48 = vmax.f32 %v140_v21, 0.0 }
  0xa8   :  { %v193_v49 = vsel %vm112_vm0, %v176_v48, 0.0 }
 0x10e   :  { %v180_v17 = vpop.permute.xlu0 %179 }
 0x10f   :  { %v185_v18 = vadd.f32 %v180_v17, %v619_v16 }
 0x111   :  { %v187_v20 = vmax.f32 %v185_v18, 0.0 }
 0x113   :  { %249 = vrot.lane.b32.xlu1 %v187_v20, %s548_s20 }
 0x116   :  { %v182_v22 = vpop.permute.xlu0 %181 }
 0x117   :  { %v186_v23 = vadd.f32 %v182_v22, %v140_v21 }
 0x119   :  { %v188_v24 = vmax.f32 %v186_v23, 0.0 }
 0x11b   :  { %251 = vrot.lane.b32.xlu1 %v188_v24, %s548_s20 }
 0x185   :  { %v250_v25 = vpop.permute.xlu1 %249 }
 0x186   :  { %v255_v26 = vsel %vm112_vm0, %v250_v25, 0.0 }
 0x187   :  { %256 = vadd.xlane.f32.xlu2 %v255_v26 }
 0x18d   :  { %v252_v27 = vpop.permute.xlu1 %251 }
 0x18e   :  { %v258_v28 = vsel %vm112_vm0, %v252_v27, 0.0 }
 0x18f   :  { %259 = vadd.xlane.f32.xlu2 %v258_v28 }
 0x197   :  { %191 = vadd.xlane.f32.xlu2 %v190_v30 }
 0x1af   :  { %309 = vrot.lane.b32.xlu2 %v307_v47, %s547_s4 }
 0x1fa   :  { %v257_v38 = vpop.xlane.xlu2 %256 }
 0x1fb   :  { %v261_v39 = vmul.f32 %v257_v38, %v628_v37 }
 0x1fd   :  { %v263_v40 = vsub.f32 %v187_v20, %v261_v39 }
 0x1ff   :  { %v265_v41 = vmul.f32 %v263_v40, %v263_v40 }
 0x201   :  { %269 = vrot.lane.b32.xlu0 %v265_v41, %s548_s20 }
 0x202   :  { %v260_v42 = vpop.xlane.xlu2 %259 }
 0x203   :  { %v262_v43 = vmul.f32 %v260_v42, %v628_v37 }
 0x205   :  { %v633_v44 = vsub.f32 %v188_v24, %v262_v43 }
 0x207   :  { %v266_v45 = vmul.f32 %v633_v44, %v633_v44 }
 0x209   :  { %271 = vrot.lane.b32.xlu1 %v266_v45, %s548_s20 }
 0x20a   :  { %v192_v60 = vpop.xlane.xlu2 %191 }
 0x20b   :  { %v203_v61 = vmul.f32 %v628_v37, %v192_v60 }
 0x20d   :  { %v657_v62 = vsub.f32 %v175_v29, %v203_v61 }
 0x20f   :  { %v207_v63 = vmul.f32 %v657_v62, %v657_v62 }
 0x211   :  { %v209_v0 = vsel %vm112_vm0, %v207_v63, 0.0 }
 0x212   :  { %v310_v1 = vpop.permute.xlu2 %309 }
 0x22b   :  { %194 = vadd.xlane.f32.xlu0 %v193_v49 }
 0x273   :  { %v270_v50 = vpop.permute.xlu0 %269 }
 0x274   :  { %v275_v51 = vsel %vm112_vm0, %v270_v50, 0.0  ;;  %v241_v50 = vperm.slane %v641_v46, 0 }
 0x275   :  { %276 = vadd.xlane.f32.xlu1 %v275_v51 }
 0x27b   :  { %v272_v52 = vpop.permute.xlu1 %271 }
 0x27c   :  { %v278_v53 = vsel %vm112_vm0, %v272_v52, 0.0 }
 0x27d   :  { %279 = vadd.xlane.f32.xlu2 %v278_v53  ;;  %v244_v53 = vperm.slane %v641_v46, 1 }
 0x295   :  { %316 = vrot.lane.b32.xlu2 %v314_v54, %s547_s4 }
 0x29e   :  { %v195_v55 = vpop.xlane.xlu0 %194 }
 0x29f   :  { %v204_v56 = vmul.f32 %v628_v37, %v195_v55 }
 0x2a1   :  { %v651_v57 = vsub.f32 %v176_v48, %v204_v56 }
 0x2a3   :  { %v208_v58 = vmul.f32 %v651_v57, %v651_v57 }
 0x2a5   :  { %v212_v59 = vsel %vm112_vm0, %v208_v58, 0.0 }
 0x2a6   :  { %213 = vadd.xlane.f32.xlu0 %v212_v59 }
 0x2be   :  { %210 = vadd.xlane.f32.xlu2 %v209_v0 }
 0x2e8   :  { %v277_v2 = vpop.xlane.xlu1 %276 }
 0x2e9   :  { %v281_v3 = vmul.f32 %v277_v2, %v628_v37 }
 0x2eb   :  { %v283_v4 = vadd.f32 1e-05, %v281_v3 }
 0x2ed   :  { %380 = vrsqrt.f32 %v283_v4  ;;  %vm291_vm3 = vweird.f32 %v283_v4 }
 0x2f0   :  { %v280_v5 = vpop.xlane.xlu2 %279 }
 0x2f1   :  { %v282_v6 = vmul.f32 %v280_v5, %v628_v37 }
 0x2f3   :  { %v381_v7 = vpop.eup %380  ;;  %v284_v8 = vadd.f32 1e-05, %v282_v6 }
 0x2f4   :  { %v286_v9 = vmul.f32 %v381_v7, %v283_v4  ;;  %vm292_vm2 = vweird.f32 %v381_v7 }
 0x2f5   :  { %382 = vrsqrt.f32 %v284_v8  ;;  %vm293_vm4 = vmor %vm291_vm3, %vm292_vm2  ;;  %vm301_vm6 = vweird.f32 %v284_v8 }
 0x2f6   :  { %v287_v10 = vmul.f32 %v381_v7, %v286_v9 }
 0x2f8   :  { %v288_v11 = vmul.f32 0.5, %v287_v10  ;;  %v317_v20 = vpop.permute.xlu2 %316 }
 0x2fa   :  { %v289_v12 = vsub.f32 1.5, %v288_v11 }
 0x2fb   :  { %v383_v13 = vpop.eup %382 }
 0x2fc   :  { %v290_v14 = vmul.f32 %v381_v7, %v289_v12  ;;  %v296_v15 = vmul.f32 %v383_v13, %v284_v8  ;;  %vm302_vm5 = vweird.f32 %v383_v13 }
 0x2fd   :  { %vm303_vm7 = vmor %vm301_vm6, %vm302_vm5 }
 0x2fe   :  { %v297_v16 = vmul.f32 %v383_v13, %v296_v15  ;;  %v294_v17 = vsel %vm293_vm4, %v381_v7, %v290_v14 }
 0x2ff   :  { %v305_v18 = vmul.f32 %v294_v17, %v263_v40 }
 0x300   :  { %v298_v19 = vmul.f32 0.5, %v297_v16 }
 0x301   :  { %v312_v21 = vmul.f32 %v310_v1, %v305_v18 }
 0x302   :  { %v299_v22 = vsub.f32 1.5, %v298_v19 }
 0x303   :  { %v319_v23 = vadd.f32 %v317_v20, %v312_v21 }
 0x304   :  { %v300_v24 = vmul.f32 %v383_v13, %v299_v22 }
 0x305   :  { %323 = vrot.lane.b32.xlu1 %v319_v23, %s548_s20 }
 0x306   :  { %v304_v25 = vsel %vm303_vm7, %v383_v13, %v300_v24 }
 0x307   :  { %v306_v26 = vmul.f32 %v304_v25, %v633_v44 }
 0x309   :  { %v313_v27 = vmul.f32 %v310_v1, %v306_v26 }
 0x30b   :  { %v320_v28 = vadd.f32 %v317_v20, %v313_v27 }
 0x30d   :  { %325 = vrot.lane.b32.xlu0 %v320_v28, %s548_s20 }
 0x319   :  { %v214_v32 = vpop.xlane.xlu0 %213 }
 0x31a   :  { %v216_v33 = vmul.f32 %v214_v32, %v628_v37 }
 0x31c   :  { %v218_v34 = vadd.f32 1e-05, %v216_v33 }
 0x31e   :  { %vm235_vm12 = vweird.f32 %v218_v34 }
 0x331   :  { %v211_v29 = vpop.xlane.xlu2 %210 }
 0x332   :  { %v215_v30 = vmul.f32 %v211_v29, %v628_v37 }
 0x334   :  { %v217_v31 = vadd.f32 1e-05, %v215_v30 }
 0x336   :  { %384 = vrsqrt.f32 %v217_v31  ;;  %vm225_vm9 = vweird.f32 %v217_v31 }
 0x337   :  { %386 = vrsqrt.f32 %v218_v34 }
 0x33c   :  { %v385_v35 = vpop.eup %384 }
 0x33d   :  { %v220_v36 = vmul.f32 %v385_v35, %v217_v31  ;;  %v387_v39 = vpop.eup %386  ;;  %vm226_vm8 = vweird.f32 %v385_v35 }
 0x33e   :  { %v230_v40 = vmul.f32 %v387_v39, %v218_v34  ;;  %vm227_vm10 = vmor %vm225_vm9, %vm226_vm8  ;;  %vm236_vm11 = vweird.f32 %v387_v39 }
 0x33f   :  { %v221_v38 = vmul.f32 %v385_v35, %v220_v36  ;;  %vm237_vm13 = vmor %vm235_vm12, %vm236_vm11 }
 0x340   :  { %v231_v42 = vmul.f32 %v387_v39, %v230_v40 }
 0x341   :  { %v222_v41 = vmul.f32 0.5, %v221_v38 }
 0x342   :  { %v232_v44 = vmul.f32 0.5, %v231_v42 }
 0x343   :  { %v223_v43 = vsub.f32 1.5, %v222_v41 }
 0x344   :  { %v233_v47 = vsub.f32 1.5, %v232_v44 }
 0x345   :  { %v224_v45 = vmul.f32 %v385_v35, %v223_v43 }
 0x346   :  { %v234_v49 = vmul.f32 %v387_v39, %v233_v47 }
 0x347   :  { %v228_v48 = vsel %vm227_vm10, %v385_v35, %v224_v45 }
 0x348   :  { %v239_v37 = vmul.f32 %v228_v48, %v657_v62  ;;  %v238_v52 = vsel %vm237_vm13, %v387_v39, %v234_v49 }
 0x349   :  { %v240_v55 = vmul.f32 %v238_v52, %v651_v57 }
 0x34a   :  { %v242_v51 = vmul.f32 %v241_v50, %v239_v37 }
 0x34b   :  { %v243_v59 = vmul.f32 %v241_v50, %v240_v55 }
 0x34c   :  { %v245_v54 = vadd.f32 %v244_v53, %v242_v51 }
 0x34d   :  { %v246_v60 = vadd.f32 %v244_v53, %v243_v59 }
 0x377   :  { %v324_v56 = vpop.permute.xlu1 %323 }
 0x378   :  { %v329_v58 = vmul.f32 %v324_v56, %v245_v54 }
 0x37a   :  { %331 = vst.msk [vmem:[#allocation11] sm:$0xff] %vm112_vm0, %v329_v58 }
 0x37f   :  { %v326_v61 = vpop.permute.xlu0 %325 }
 0x380   :  { %v330_v62 = vmul.f32 %v326_v61, %v246_v60 }
 0x382   :  { %332 = vst.msk [vmem:[#allocation11 + $0x8] sm:$0xff] %vm112_vm0, %v330_v62 }
 0x383   :  { %345 = dma.vmem_to_hbm [thread:$0]  %s338_s23, 256, %s340_s26, [#allocation4], %s541_s29, %s541_s29, %s542_s30  }
 0x384   :  { %538 = dma.done.wait [#allocation4], 256  }
 0x385   :  { %539 = vsyncadd [#allocation4], 4294967040 }
 0x386   :  { %350 = vsyncpa [#allocation3], 1 }
 0x387   :  { %351 = vsyncpa [#allocation6], 1 }
 0x388   :  { %352 = vsyncpa [#allocation9], 1 }
 0x389   :  { %353 = vsyncpa [#allocation4], 1 }

</bundles_post_ra>
